<compile_context>
chip_gen: v7x
topology: tpu7x:2x2x1
jax: 0.10.0
libtpu: 0.0.40
codegen_flags: <defaults>
</compile_context>

<pallas_src>
import jax
import jax.numpy as jnp
from jax import lax
from jax.experimental import pallas as pl
from jax.experimental.pallas import tpu as pltpu

C_IN, C_OUT, K = 3, 8, 3


def _round_up(x, m):
    return (x + m - 1) // m * m


def _pick_tile(n_cols):
    """Column tile for the wide output (n_cols = H * (W + 2)).

    Largest multiple-of-128 divisor of n_cols that still leaves >= 2 grid steps
    (so v7x can shard the parallel axis across its two TensorCores) and stays
    <= 32768 columns (comfortable double-buffered VMEM on every generation).
    Falls back to a single full block for small / non-128-divisible sizes.
    """
    if n_cols % 128 != 0:
        return n_cols
    cap = min(n_cols // 2, 32 * 1024)
    best = n_cols
    t = 128
    while t <= cap:
        if n_cols % t == 0:
            best = t
        t += 128
    return best


@jax.jit
def model_forward(x1, w_t, bias):
    """x1: (1, C_IN, H, W) NCHW.  w_t: (C_IN, C_OUT, K, K) (PyTorch
    ConvTranspose2d layout).  bias: (C_OUT,).  Returns (C_OUT, H, W)."""
    # v1 = avg_pool2d(x1, 1, 1, 0): identity (window sum / 1).
    v1 = x1
    # v2 = torch.squeeze(v1): only the batch dim is size-1 for this model, so
    # squeeze it explicitly (H==1 / W==1 inputs can't silently change rank).
    v2 = jnp.squeeze(v1, axis=0).astype(jnp.float32)          # (C_IN, H, W)
    _, H, W = v2.shape
    Wp = W + 2                                                  # padded width
    n_wide = H * Wp                                             # wide output cols

    # conv_transpose2d(stride=1, padding=1, k=3) == SAME correlation with the
    # spatially flipped kernel and swapped in/out channels.
    wf = jnp.transpose(w_t, (1, 0, 2, 3))[:, :, ::-1, ::-1]     # (C_OUT,C_IN,K,K)
    # w9[ky*K + kx] is the (C_OUT, C_IN) matrix for spatial offset (ky, kx).
    w9 = jnp.transpose(wf, (2, 3, 0, 1)).reshape(K * K, C_OUT, C_IN)
    b2 = bias.reshape(C_OUT, 1).astype(jnp.float32)

    # Zero-pad spatially and flatten each channel row-major.  A (ky, kx) shift
    # of the padded image is then a *contiguous* slice of this flat array at
    # offset ky*Wp + kx, so the kernel rebuilds all nine shifted views from one
    # VMEM-resident window -- no HBM im2col round-trip.
    xpad = jnp.pad(v2, ((0, 0), (1, 1), (1, 1)))                # (C_IN, H+2, Wp)
    xflat = xpad.reshape(C_IN, (H + 2) * Wp)

    tile = _pick_tile(n_wide)
    slack = _round_up(2 * Wp + 2, 128)        # max shift, rounded for alignment
    win = tile + slack                        # per-step input window width
    l_flat = _round_up(n_wide + slack, 128)   # flat input length incl. slack
    xf = jnp.pad(xflat, ((0, 0), (0, l_flat - (H + 2) * Wp)))

    def kernel(xf_ref, w_ref, b_ref, o_ref):
        t = o_ref.shape[-1]
        j0 = pl.program_id(0) * t
        if t % 128 == 0:
            j0 = pl.multiple_of(j0, 128)
        # One aligned window load; the nine shifted views are static slices of
        # it (cheap in-register lane shifts), never separate HBM traffic.
        big = xf_ref[:, pl.ds(j0, win)]                         # (C_IN, win)
        # Bias added in-kernel (no constant rows shipped through HBM).
        acc = jnp.broadcast_to(b_ref[...], (C_OUT, t)).astype(jnp.float32)
        for k in range(K * K):
            ky, kx = divmod(k, K)
            off = ky * Wp + kx
            acc = acc + jnp.dot(w_ref[k], big[:, off:off + t],
                                preferred_element_type=jnp.float32)
        o_ref[...] = acc                                        # lane-dense store

    grid = (n_wide // tile,)
    owide = pl.pallas_call(
        kernel,
        out_shape=jax.ShapeDtypeStruct((C_OUT, n_wide), jnp.float32),
        grid=grid,
        in_specs=[
            # Whole flat padded input stays resident in VMEM (constant block
            # index -> fetched once, not re-DMA'd per step).
            pl.BlockSpec((C_IN, l_flat), lambda j: (0, 0)),
            pl.BlockSpec((K * K, C_OUT, C_IN), lambda j: (0, 0, 0)),
            pl.BlockSpec((C_OUT, 1), lambda j: (0, 0)),
        ],
        out_specs=pl.BlockSpec((C_OUT, tile), lambda j: (0, j)),
        compiler_params=pltpu.CompilerParams(
            dimension_semantics=("parallel",)),
    )(xf, w9, b2)

    # Drop the two junk columns per row introduced by the horizontal padding.
    return owide.reshape(C_OUT, H, Wp)[:, :, :W]


if __name__ == "__main__":
    key = jax.random.PRNGKey(0)
    kx, kw, kb = jax.random.split(key, 3)

    H = W = 64  # matches the module's (1, 3, 64, 64) input
    x1 = jax.random.normal(kx, (1, C_IN, H, W), dtype=jnp.float32)

    # Deterministic ConvTranspose2d parameters (PyTorch layout: (in, out, kH, kW)).
    bound = 1.0 / float((C_IN * K * K) ** 0.5)
    w_t = jax.random.uniform(kw, (C_IN, C_OUT, K, K), minval=-bound, maxval=bound,
                             dtype=jnp.float32)
    bias = jax.random.uniform(kb, (C_OUT,), minval=-bound, maxval=bound,
                              dtype=jnp.float32)

    out = jax.block_until_ready(model_forward(x1, w_t, bias))
    assert out.shape == (C_OUT, H, W), out.shape

    # Reference: conv_transpose2d(s=1, p=1) == SAME correlation w/ flipped kernel.
    w_flip = jnp.transpose(w_t, (1, 0, 2, 3))[:, :, ::-1, ::-1]
    ref = lax.conv_general_dilated(
        jnp.squeeze(x1, axis=0)[None], w_flip, window_strides=(1, 1),
        padding="SAME", dimension_numbers=("NCHW", "OIHW", "NCHW"))[0] \
        + bias[:, None, None]
    err = float(jnp.max(jnp.abs(out - ref)))
    assert jnp.allclose(out, ref, atol=2e-4, rtol=2e-4), err

    print("KERNEL_OK")
</pallas_src>

<mosaic_0001>
module attributes {stable_mosaic.version = 11 : i64} {
  func.func @kernel(%arg0: i32, %arg1: memref<3x4480xf32, #tpu.memory_space<vmem>>, %arg2: memref<9x8x3xf32, #tpu.memory_space<vmem>>, %arg3: memref<8x1xf32, #tpu.memory_space<vmem>>, %arg4: memref<8x1408xf32, #tpu.memory_space<vmem>>) attributes {dimension_semantics = [#tpu.dimension_semantics<parallel>], iteration_bounds = array<i64: 3>, scalar_prefetch = 0 : i64, scratch_operands = 0 : i64, tpu.core_type = #tpu.core_type<tc>, window_params = [{pipeline_mode = #tpu.pipeline_mode<synchronous>, transform_indices = @transform_0, window_bounds = array<i64: 3, 4480>}, {pipeline_mode = #tpu.pipeline_mode<synchronous>, transform_indices = @transform_1, window_bounds = array<i64: 9, 8, 3>}, {pipeline_mode = #tpu.pipeline_mode<synchronous>, transform_indices = @transform_2, window_bounds = array<i64: 8, 1>}, {transform_indices = @transform_3, window_bounds = array<i64: 8, 1408>}]} {
    %c1408_i32 = arith.constant 1408 : i32
    %0 = arith.muli %arg0, %c1408_i32 : i32
    %1 = tpu.assume_multiple %0, 128 : i32
    %c0 = arith.constant 0 : index
    %2 = arith.index_cast %1 : i32 to index
    %3 = vector.load %arg1[%c0, %2] : memref<3x4480xf32, #tpu.memory_space<vmem>>, vector<3x1664xf32>
    %c0_0 = arith.constant 0 : index
    %c0_1 = arith.constant 0 : index
    %4 = vector.load %arg3[%c0_0, %c0_1] : memref<8x1xf32, #tpu.memory_space<vmem>>, vector<8x1xf32>
    %5 = vector.shape_cast %4 : vector<8x1xf32> to vector<8x1xf32>
    %6 = vector.broadcast %5 : vector<8x1xf32> to vector<8x1408xf32>
    %c0_2 = arith.constant 0 : index
    %c0_3 = arith.constant 0 : index
    %c0_4 = arith.constant 0 : index
    %7 = vector.load %arg2[%c0_2, %c0_3, %c0_4] : memref<9x8x3xf32, #tpu.memory_space<vmem>>, vector<1x8x3xf32>
    %8 = vector.shape_cast %7 : vector<1x8x3xf32> to vector<8x3xf32>
    %9 = vector.extract_strided_slice %3 {offsets = [0, 0], sizes = [3, 1408], strides = [1, 1]} : vector<3x1664xf32> to vector<3x1408xf32>
    %cst = arith.constant dense<0.000000e+00> : vector<8x1408xf32>
    %10 = tpu.matmul %8, %9, %cst {dimension_numbers = #tpu.dot_dimension_numbers<[1], [0], [0], [1], [0, 0, 1, 1], [], []>} : vector<8x3xf32>, vector<3x1408xf32>, vector<8x1408xf32> -> vector<8x1408xf32>
    %11 = arith.addf %6, %10 : vector<8x1408xf32>
    %c1 = arith.constant 1 : index
    %c0_5 = arith.constant 0 : index
    %c0_6 = arith.constant 0 : index
    %12 = vector.load %arg2[%c1, %c0_5, %c0_6] : memref<9x8x3xf32, #tpu.memory_space<vmem>>, vector<1x8x3xf32>
    %13 = vector.shape_cast %12 : vector<1x8x3xf32> to vector<8x3xf32>
    %14 = vector.extract_strided_slice %3 {offsets = [0, 1], sizes = [3, 1408], strides = [1, 1]} : vector<3x1664xf32> to vector<3x1408xf32>
    %cst_7 = arith.constant dense<0.000000e+00> : vector<8x1408xf32>
    %15 = tpu.matmul %13, %14, %cst_7 {dimension_numbers = #tpu.dot_dimension_numbers<[1], [0], [0], [1], [0, 0, 1, 1], [], []>} : vector<8x3xf32>, vector<3x1408xf32>, vector<8x1408xf32> -> vector<8x1408xf32>
    %16 = arith.addf %11, %15 : vector<8x1408xf32>
    %c2 = arith.constant 2 : index
    %c0_8 = arith.constant 0 : index
    %c0_9 = arith.constant 0 : index
    %17 = vector.load %arg2[%c2, %c0_8, %c0_9] : memref<9x8x3xf32, #tpu.memory_space<vmem>>, vector<1x8x3xf32>
    %18 = vector.shape_cast %17 : vector<1x8x3xf32> to vector<8x3xf32>
    %19 = vector.extract_strided_slice %3 {offsets = [0, 2], sizes = [3, 1408], strides = [1, 1]} : vector<3x1664xf32> to vector<3x1408xf32>
    %cst_10 = arith.constant dense<0.000000e+00> : vector<8x1408xf32>
    %20 = tpu.matmul %18, %19, %cst_10 {dimension_numbers = #tpu.dot_dimension_numbers<[1], [0], [0], [1], [0, 0, 1, 1], [], []>} : vector<8x3xf32>, vector<3x1408xf32>, vector<8x1408xf32> -> vector<8x1408xf32>
    %21 = arith.addf %16, %20 : vector<8x1408xf32>
    %c3 = arith.constant 3 : index
    %c0_11 = arith.constant 0 : index
    %c0_12 = arith.constant 0 : index
    %22 = vector.load %arg2[%c3, %c0_11, %c0_12] : memref<9x8x3xf32, #tpu.memory_space<vmem>>, vector<1x8x3xf32>
    %23 = vector.shape_cast %22 : vector<1x8x3xf32> to vector<8x3xf32>
    %24 = vector.extract_strided_slice %3 {offsets = [0, 66], sizes = [3, 1408], strides = [1, 1]} : vector<3x1664xf32> to vector<3x1408xf32>
    %cst_13 = arith.constant dense<0.000000e+00> : vector<8x1408xf32>
    %25 = tpu.matmul %23, %24, %cst_13 {dimension_numbers = #tpu.dot_dimension_numbers<[1], [0], [0], [1], [0, 0, 1, 1], [], []>} : vector<8x3xf32>, vector<3x1408xf32>, vector<8x1408xf32> -> vector<8x1408xf32>
    %26 = arith.addf %21, %25 : vector<8x1408xf32>
    %c4 = arith.constant 4 : index
    %c0_14 = arith.constant 0 : index
    %c0_15 = arith.constant 0 : index
    %27 = vector.load %arg2[%c4, %c0_14, %c0_15] : memref<9x8x3xf32, #tpu.memory_space<vmem>>, vector<1x8x3xf32>
    %28 = vector.shape_cast %27 : vector<1x8x3xf32> to vector<8x3xf32>
    %29 = vector.extract_strided_slice %3 {offsets = [0, 67], sizes = [3, 1408], strides = [1, 1]} : vector<3x1664xf32> to vector<3x1408xf32>
    %cst_16 = arith.constant dense<0.000000e+00> : vector<8x1408xf32>
    %30 = tpu.matmul %28, %29, %cst_16 {dimension_numbers = #tpu.dot_dimension_numbers<[1], [0], [0], [1], [0, 0, 1, 1], [], []>} : vector<8x3xf32>, vector<3x1408xf32>, vector<8x1408xf32> -> vector<8x1408xf32>
    %31 = arith.addf %26, %30 : vector<8x1408xf32>
    %c5 = arith.constant 5 : index
    %c0_17 = arith.constant 0 : index
    %c0_18 = arith.constant 0 : index
    %32 = vector.load %arg2[%c5, %c0_17, %c0_18] : memref<9x8x3xf32, #tpu.memory_space<vmem>>, vector<1x8x3xf32>
    %33 = vector.shape_cast %32 : vector<1x8x3xf32> to vector<8x3xf32>
    %34 = vector.extract_strided_slice %3 {offsets = [0, 68], sizes = [3, 1408], strides = [1, 1]} : vector<3x1664xf32> to vector<3x1408xf32>
    %cst_19 = arith.constant dense<0.000000e+00> : vector<8x1408xf32>
    %35 = tpu.matmul %33, %34, %cst_19 {dimension_numbers = #tpu.dot_dimension_numbers<[1], [0], [0], [1], [0, 0, 1, 1], [], []>} : vector<8x3xf32>, vector<3x1408xf32>, vector<8x1408xf32> -> vector<8x1408xf32>
    %36 = arith.addf %31, %35 : vector<8x1408xf32>
    %c6 = arith.constant 6 : index
    %c0_20 = arith.constant 0 : index
    %c0_21 = arith.constant 0 : index
    %37 = vector.load %arg2[%c6, %c0_20, %c0_21] : memref<9x8x3xf32, #tpu.memory_space<vmem>>, vector<1x8x3xf32>
    %38 = vector.shape_cast %37 : vector<1x8x3xf32> to vector<8x3xf32>
    %39 = vector.extract_strided_slice %3 {offsets = [0, 132], sizes = [3, 1408], strides = [1, 1]} : vector<3x1664xf32> to vector<3x1408xf32>
    %cst_22 = arith.constant dense<0.000000e+00> : vector<8x1408xf32>
    %40 = tpu.matmul %38, %39, %cst_22 {dimension_numbers = #tpu.dot_dimension_numbers<[1], [0], [0], [1], [0, 0, 1, 1], [], []>} : vector<8x3xf32>, vector<3x1408xf32>, vector<8x1408xf32> -> vector<8x1408xf32>
    %41 = arith.addf %36, %40 : vector<8x1408xf32>
    %c7 = arith.constant 7 : index
    %c0_23 = arith.constant 0 : index
    %c0_24 = arith.constant 0 : index
    %42 = vector.load %arg2[%c7, %c0_23, %c0_24] : memref<9x8x3xf32, #tpu.memory_space<vmem>>, vector<1x8x3xf32>
    %43 = vector.shape_cast %42 : vector<1x8x3xf32> to vector<8x3xf32>
    %44 = vector.extract_strided_slice %3 {offsets = [0, 133], sizes = [3, 1408], strides = [1, 1]} : vector<3x1664xf32> to vector<3x1408xf32>
    %cst_25 = arith.constant dense<0.000000e+00> : vector<8x1408xf32>
    %45 = tpu.matmul %43, %44, %cst_25 {dimension_numbers = #tpu.dot_dimension_numbers<[1], [0], [0], [1], [0, 0, 1, 1], [], []>} : vector<8x3xf32>, vector<3x1408xf32>, vector<8x1408xf32> -> vector<8x1408xf32>
    %46 = arith.addf %41, %45 : vector<8x1408xf32>
    %c8 = arith.constant 8 : index
    %c0_26 = arith.constant 0 : index
    %c0_27 = arith.constant 0 : index
    %47 = vector.load %arg2[%c8, %c0_26, %c0_27] : memref<9x8x3xf32, #tpu.memory_space<vmem>>, vector<1x8x3xf32>
    %48 = vector.shape_cast %47 : vector<1x8x3xf32> to vector<8x3xf32>
    %49 = vector.extract_strided_slice %3 {offsets = [0, 134], sizes = [3, 1408], strides = [1, 1]} : vector<3x1664xf32> to vector<3x1408xf32>
    %cst_28 = arith.constant dense<0.000000e+00> : vector<8x1408xf32>
    %50 = tpu.matmul %48, %49, %cst_28 {dimension_numbers = #tpu.dot_dimension_numbers<[1], [0], [0], [1], [0, 0, 1, 1], [], []>} : vector<8x3xf32>, vector<3x1408xf32>, vector<8x1408xf32> -> vector<8x1408xf32>
    %51 = arith.addf %46, %50 : vector<8x1408xf32>
    %c0_29 = arith.constant 0 : index
    %c0_30 = arith.constant 0 : index
    %52 = vector.load %arg4[%c0_29, %c0_30] : memref<8x1408xf32, #tpu.memory_space<vmem>>, vector<8x1408xf32>
    tpu.vector_store %arg4[%c0_29, %c0_30], %51 {strides = array<i32>} : memref<8x1408xf32, #tpu.memory_space<vmem>>, vector<8x1408xf32>,
    return
  }
  func.func @transform_0(%arg0: i32) -> (i32, i32) {
    %c0_i32 = arith.constant 0 : i32
    %c0_i32_0 = arith.constant 0 : i32
    %c0_i32_1 = arith.constant 0 : i32
    return %c0_i32, %c0_i32_0 : i32, i32
  }
  func.func @transform_1(%arg0: i32) -> (i32, i32, i32) {
    %c0_i32 = arith.constant 0 : i32
    %c0_i32_0 = arith.constant 0 : i32
    %c0_i32_1 = arith.constant 0 : i32
    %c0_i32_2 = arith.constant 0 : i32
    return %c0_i32, %c0_i32_0, %c0_i32_1 : i32, i32, i32
  }
  func.func @transform_2(%arg0: i32) -> (i32, i32) {
    %c0_i32 = arith.constant 0 : i32
    %c0_i32_0 = arith.constant 0 : i32
    %c0_i32_1 = arith.constant 0 : i32
    return %c0_i32, %c0_i32_0 : i32, i32
  }
  func.func @transform_3(%arg0: i32) -> (i32, i32) {
    %c0_i32 = arith.constant 0 : i32
    %c0_i32_0 = arith.constant 0 : i32
    return %c0_i32, %arg0 : i32, i32
  }
}

</mosaic_0001>

<bundles_post_ra>
// kernel: model_forward.1
= control target key start
LH: loop header
LB: loop body
LE: loop exit
PB: predicated region body
PF: predicated region fallthrough
CT: control target
= control target key end

     0   :  { %s5100_s12 = smov 0   ;;  %s5679_s0 = inlined_call_operand.vmem [shape: f32[3,4480], index: 0, kind: input, shape index: {}]   ;;  %s5680_s1 = inlined_call_operand.vmem [shape: f32[9,8,3], index: 1, kind: input, shape index: {}]   ;;  %s5681_s2 = inlined_call_operand.vmem [shape: f32[8,1], index: 2, kind: input, shape index: {}]   ;;  %s5682_s3 = inlined_call_operand.vmem [shape: f32[8,4224], index: 3, kind: output, shape index: {}]  }
   0x1 LB: > { %s4696_s13 = sadd.s32 4294967295, %s5067_s12   ;;  %p4699_p0 = scmp.ge.s32.totalorder %s5067_s12, 1  ;;  %s5067_s12 = sphi %s5100_s12, %s13_s12  }
   0x2   : > { %p127_p1 = scmp.lt.s32.totalorder %s5067_s12, 4 }
   0x4   : > { %p128_p2 = pnand %p4699_p0, %p127_p1 }
   0x5   : > { %s152_s14 = smul.u32 (!%p128_p2), 1408, %s4696_s13  ;;  %v5069_v0 = vmov (!%p128_p2), 0.0   ;;  %vm186_vm0 = vcmask (!%p128_p2), 1042432   ;;  %s5070_s20 = smov (!%p128_p2), 127   ;;  %v170_v7 = vld [vmem:[%s5680_s1] sm:$0xff] (!%p128_p2)  ;;  %vm182_vm1 = vcmask (!%p128_p2), 23552  }
   0x6   : > { %131 = sbr.rel (%p128_p2) target bundleno = 533 (0x215), region = 32  ;;  %344 = vmatprep.mubr.f32.mxu1 (!%p128_p2), %v5069_v0  ;;  %273 = vmatprep.mubr.f32.mxu0 (!%p128_p2), %v5069_v0  ;;  %vm5071_vm2 = vmmov (!%p128_p2), 0   ;;  %s5072_s23 = smov (!%p128_p2), 126   ;;  %vm672_vm3 = vcmask (!%p128_p2), 1039360   ;;  %v4719_v21 = vld [vmem:[%s5680_s1 + $0x8] sm:$0xff] (!%p128_p2)  ;;  %vm1171_vm4 = vcmask (!%p128_p2), 1031168  }
   0x7   : > { %s153_s15 = sshra.s32 (!%p128_p2), %s152_s14, 7  ;;  %s5073_s24 = smov (!%p128_p2), 62   ;;  %v4737_v43 = vld [vmem:[%s5680_s1 + $0x10] sm:$0xff] (!%p128_p2)  ;;  %vm1670_vm5 = vcmask (!%p128_p2), 506880   ;;  %vm2169_vm6 = vcmask (!%p128_p2), 498688   ;;  %vm2668_vm7 = vcmask (!%p128_p2), 490496  }
   0x8   : > { %s4701_s16 = sshll.u32 (!%p128_p2), %s153_s15, 2  ;;  %s5074_s25 = smov (!%p128_p2), 61   ;;  %vm3168_vm8 = vcmask (!%p128_p2), 1014784   ;;  %vm3667_vm9 = vcmask (!%p128_p2), 1006592   ;;  %vm4166_vm10 = vcmask (!%p128_p2), 998400  }
   0x9   : > { %s5115_s19 = scalar_lea.vmem (!%p128_p2), %s5679_s0, %s4701_s16  ;;  %s5075_s26 = smov (!%p128_p2), 60  }
   0xa   : > { %v5118_v1 = vld [vmem:[%s5115_s19 + $0x8] sm:$0x77] (!%p128_p2)  ;;  %v5121_v2 = vld [vmem:[%s5115_s19 + $0x18] sm:$0x77] (!%p128_p2)  ;;  %v5126_v3 = vld [vmem:[%s5115_s19] sm:$0x77] (!%p128_p2) }
   0xb   : > { %652 = vrot.lane.b32.xlu0 (!%p128_p2), %v5118_v1, %s5070_s20  ;;  %v5130_v4 = vcombine.high (!%p128_p2), %v5118_v1, %v5118_v1  ;;  %648 = vrot.lane.b32.xlu1 (!%p128_p2), %v5126_v3, %s5070_s20  ;;  %v5136_v5 = vcombine.high (!%p128_p2), %v5126_v3, %v5126_v3  ;;  %v5139_v6 = vld [vmem:[%s5115_s19 + $0x10] sm:$0x77] (!%p128_p2)  ;;  %v5148_v8 = vcombine.high (!%p128_p2), %v5121_v2, %v5121_v2  ;;  %v5175_v10 = vld [vmem:[%s5115_s19 + $0x20] sm:$0x77] (!%p128_p2)  ;;  %s5076_s27 = smov (!%p128_p2), 124   ;;  %s5077_s5 = smov (!%p128_p2), 123  }
   0xc   : > { %v5161_v9 = vcombine.high (!%p128_p2), %v5139_v6, %v5139_v6  ;;  %v5178_v11 = vld [vmem:[%s5115_s19 + $0x28] sm:$0x77] (!%p128_p2)  ;;  %v5195_v12 = vcombine.high (!%p128_p2), %v5175_v10, %v5175_v10  ;;  %v5326_v39 = vld [vmem:[%s5115_s19 + $0x30] sm:$0x7] (!%p128_p2)  ;;  %s5078_s8 = smov (!%p128_p2), 122  }
   0xd   : > { %4705 = vmatprep.subr.msk.mxu1 %vm186_vm0, %v5130_v4  ;;  %4702 = vmatprep.subr.msk.mxu0 %vm186_vm0, %v5136_v5  ;;  %v5214_v13 = vcombine.high %v5178_v11, %v5178_v11 }
   0xe   : > { %4706 = vmatpush1.msk.msra.mxu1 %vm186_vm0, %v5118_v1  ;;  %4703 = vmatpush1.msk.msra.mxu0 %vm186_vm0, %v5126_v3 }
   0xf   : > { %656 = vrot.lane.b32.xlu0 %v5139_v6, %s5070_s20  ;;  %4707 = vmatmul.mubr.msk.f32.vlgmr.msra.gmra.mrb[0].mxu1 %vm182_vm1, %v170_v7 }
  0x10   : > { %654 = vrot.lane.b32.xlu1 %v5130_v4, %s5070_s20  ;;  %4711 = vmatprep.subr.msk.mxu1 %vm186_vm0, %v5148_v8 }
  0x11   : > { %4712 = vmatpush1.msk.msra.mxu1 %vm186_vm0, %v5121_v2  ;;  %486 = vmatprep.mubr.f32.mxu1 %v5069_v0 }
  0x12   : > { %4883 = vmatprep.subr.mxu1 %v5069_v0  ;;  %4704 = vmatmul.mubr.msk.f32.vlgmr.msra.gmra.mrb[0].mxu0 %vm182_vm1, %v170_v7 }
  0x13   : > { %650 = vrot.lane.b32.xlu0 %v5136_v5, %s5070_s20  ;;  %4713 = vmatmul.mubr.msk.f32.vlgmr.msra.gmra.mrb[2].mxu1 %vm182_vm1, %v170_v7 }
  0x14   : > { %658 = vrot.lane.b32.xlu1 %v5161_v9, %s5070_s20  ;;  %4708 = vmatprep.subr.msk.mxu0 %vm186_vm0, %v5161_v9 }
  0x15   : > { %4884 = vmatpush3.msk.msra.mxu1 %vm186_vm0, %v5178_v11  ;;  %4885 = vmatprep.mubr.msk.f32.mxu1 %vm5071_vm2, %v5069_v0 }
  0x16   : > { %4709 = vmatpush1.msk.msra.mxu0 %vm186_vm0, %v5139_v6  ;;  %415 = vmatprep.mubr.f32.mxu0 %v5069_v0 }
  0x17   : > { %660 = vrot.lane.b32.xlu0 %v5121_v2, %s5070_s20  ;;  %4710 = vmatmul.mubr.msk.f32.vlgmr.msra.gmra.mrb[2].mxu0 %vm182_vm1, %v170_v7 }
  0x18   : > { %662 = vrot.lane.b32.xlu1 %v5148_v8, %s5070_s20  ;;  %4886 = vmatmul.mubr.msk.f32.vlgmr.msra.gmra.mrb[4].mxu1 %vm182_vm1, %v170_v7 }
  0x19   : > { %4714 = vmatprep.subr.msk.mxu0 %vm186_vm0, %v5195_v12  ;;  %557 = vmatprep.mubr.f32.mxu0 %v5069_v0 }
  0x1a   : > { %4715 = vmatpush1.msk.msra.mxu0 %vm186_vm0, %v5175_v10  ;;  %844 = vmatprep.mubr.f32.mxu1 %v5069_v0 }
  0x1b   : > { %664 = vrot.lane.b32.xlu0 %v5175_v10, %s5070_s20  ;;  %4716 = vmatmul.mubr.msk.f32.vlgmr.msra.gmra.mrb[4].mxu0 %vm182_vm1, %v170_v7 }
  0x1c   : > { %666 = vrot.lane.b32.xlu1 %v5195_v12, %s5070_s20  ;;  %773 = vmatprep.mubr.f32.mxu0 %v5069_v0 }
  0x1f   : > { %668 = vrot.lane.b32.xlu0 %v5178_v11, %s5070_s20 }
  0x20   : > { %670 = vrot.lane.b32.xlu1 %v5214_v13, %s5070_s20 }
  0x23   : > { %1149 = vrot.lane.b32.xlu0 %v5136_v5, %s5072_s23 }
  0x24   : > { %1151 = vrot.lane.b32.xlu1 %v5118_v1, %s5072_s23 }
  0x27   : > { %1147 = vrot.lane.b32.xlu0 %v5126_v3, %s5072_s23 }
  0x28   : > { %1153 = vrot.lane.b32.xlu1 %v5130_v4, %s5072_s23 }
  0x2b   : > { %1155 = vrot.lane.b32.xlu0 %v5139_v6, %s5072_s23 }
  0x2c   : > { %1157 = vrot.lane.b32.xlu1 %v5161_v9, %s5072_s23 }
  0x2f   : > { %1159 = vrot.lane.b32.xlu0 %v5121_v2, %s5072_s23 }
  0x30   : > { %1161 = vrot.lane.b32.xlu1 %v5148_v8, %s5072_s23 }
  0x33   : > { %1163 = vrot.lane.b32.xlu0 %v5175_v10, %s5072_s23 }
  0x34   : > { %1165 = vrot.lane.b32.xlu1 %v5195_v12, %s5072_s23 }
  0x37   : > { %1167 = vrot.lane.b32.xlu0 %v5178_v11, %s5072_s23 }
  0x38   : > { %1169 = vrot.lane.b32.xlu1 %v5214_v13, %s5072_s23  ;;  %s146_s23 = smul.u32 11, %s4696_s13 }
  0x3a   : > { %p147_p3 = scmp.lt.s32.totalorder %s146_s23, 32 }
  0x3b   : > { %1648 = vrot.lane.b32.xlu0 %v5136_v5, %s5073_s24 }
  0x3c   : > { %1650 = vrot.lane.b32.xlu1 %v5118_v1, %s5073_s24  ;;  %s5684_s23 = smov (!%p147_p3, %s146_s23), 32 }
  0x3f   : > { %1646 = vrot.lane.b32.xlu0 %v5126_v3, %s5073_s24 }
  0x40   : > { %1652 = vrot.lane.b32.xlu1 %v5130_v4, %s5073_s24 }
  0x43   : > { %1654 = vrot.lane.b32.xlu0 %v5139_v6, %s5073_s24 }
  0x44   : > { %1656 = vrot.lane.b32.xlu1 %v5161_v9, %s5073_s24 }
  0x47   : > { %1658 = vrot.lane.b32.xlu0 %v5121_v2, %s5073_s24 }
  0x48   : > { %1660 = vrot.lane.b32.xlu1 %v5148_v8, %s5073_s24 }
  0x4b   : > { %1662 = vrot.lane.b32.xlu0 %v5175_v10, %s5073_s24 }
  0x4c   : > { %1664 = vrot.lane.b32.xlu1 %v5195_v12, %s5073_s24 }
  0x4f   : > { %1666 = vrot.lane.b32.xlu0 %v5178_v11, %s5073_s24 }
  0x50   : > { %1668 = vrot.lane.b32.xlu1 %v5214_v13, %s5073_s24  ;;  %s4700_s24 = sshll.u32 %s5684_s23, 3 }
  0x53   : > { %2147 = vrot.lane.b32.xlu0 %v5136_v5, %s5074_s25 }
  0x54   : > { %2149 = vrot.lane.b32.xlu1 %v5118_v1, %s5074_s25 }
  0x57   : > { %2145 = vrot.lane.b32.xlu0 %v5126_v3, %s5074_s25 }
  0x58   : > { %2151 = vrot.lane.b32.xlu1 %v5130_v4, %s5074_s25 }
  0x5b   : > { %2153 = vrot.lane.b32.xlu0 %v5139_v6, %s5074_s25 }
  0x5c   : > { %2155 = vrot.lane.b32.xlu1 %v5161_v9, %s5074_s25 }
  0x5f   : > { %2157 = vrot.lane.b32.xlu0 %v5121_v2, %s5074_s25 }
  0x60   : > { %2159 = vrot.lane.b32.xlu1 %v5148_v8, %s5074_s25 }
  0x63   : > { %2161 = vrot.lane.b32.xlu0 %v5175_v10, %s5074_s25 }
  0x64   : > { %2163 = vrot.lane.b32.xlu1 %v5195_v12, %s5074_s25 }
  0x67   : > { %2165 = vrot.lane.b32.xlu0 %v5178_v11, %s5074_s25 }
  0x68   : > { %2167 = vrot.lane.b32.xlu1 %v5214_v13, %s5074_s25 }
  0x6b   : > { %2646 = vrot.lane.b32.xlu0 %v5136_v5, %s5075_s26 }
  0x6c   : > { %2648 = vrot.lane.b32.xlu1 %v5118_v1, %s5075_s26 }
  0x6f   : > { %2644 = vrot.lane.b32.xlu0 %v5126_v3, %s5075_s26 }
  0x70   : > { %2650 = vrot.lane.b32.xlu1 %v5130_v4, %s5075_s26 }
  0x73   : > { %2652 = vrot.lane.b32.xlu0 %v5139_v6, %s5075_s26 }
  0x74   : > { %2654 = vrot.lane.b32.xlu1 %v5161_v9, %s5075_s26 }
  0x77   : > { %2656 = vrot.lane.b32.xlu0 %v5121_v2, %s5075_s26 }
  0x78   : > { %2658 = vrot.lane.b32.xlu1 %v5148_v8, %s5075_s26 }
  0x7b   : > { %2660 = vrot.lane.b32.xlu0 %v5175_v10, %s5075_s26 }
  0x7c   : > { %2662 = vrot.lane.b32.xlu1 %v5195_v12, %s5075_s26 }
  0x7d   : > { %v653_v14 = vpop.permute.xlu0 %652  ;;  %v649_v15 = vpop.permute.xlu1 %648 }
  0x7f   : > { %2664 = vrot.lane.b32.xlu0 %v5178_v11, %s5075_s26 }
  0x80   : > { %2666 = vrot.lane.b32.xlu1 %v5214_v13, %s5075_s26 }
  0x81   : > { %v657_v16 = vpop.permute.xlu0 %656 }
  0x82   : > { %v655_v17 = vpop.permute.xlu1 %654 }
  0x83   : > { %v675_v18 = vsel %vm672_vm3, %v653_v14, %v655_v17  ;;  %v676_v19 = vsel %vm672_vm3, %v655_v17, %v657_v16  ;;  %3146 = vrot.lane.b32.xlu0 %v5118_v1, %s5076_s27 }
  0x84   : > { %3148 = vrot.lane.b32.xlu1 %v5130_v4, %s5076_s27  ;;  %4723 = vmatprep.subr.msk.mxu1 %vm186_vm0, %v676_v19 }
  0x85   : > { %4724 = vmatpush1.msk.msra.mxu1 %vm186_vm0, %v675_v18  ;;  %v651_v20 = vpop.permute.xlu0 %650 }
  0x86   : > { %v659_v22 = vpop.permute.xlu1 %658  ;;  %v673_v23 = vsel %vm672_vm3, %v649_v15, %v651_v20  ;;  %v674_v24 = vsel %vm672_vm3, %v651_v20, %v653_v14  ;;  %4725 = vmatmul.mubr.msk.f32.vlgmr.msra.gmra.mrb[0].mxu1 %vm182_vm1, %v4719_v21  ;;  %v4755_v15 = vld [vmem:[%s5680_s1 + $0x18] sm:$0xff] }
  0x87   : > { %3144 = vrot.lane.b32.xlu0 %v5136_v5, %s5076_s27  ;;  %4720 = vmatprep.subr.msk.mxu0 %vm186_vm0, %v674_v24  ;;  %v677_v28 = vsel %vm672_vm3, %v657_v16, %v659_v22 }
  0x88   : > { %3150 = vrot.lane.b32.xlu1 %v5139_v6, %s5076_s27  ;;  %4721 = vmatpush1.msk.msra.mxu0 %vm186_vm0, %v673_v23 }
  0x89   : > { %v661_v25 = vpop.permute.xlu0 %660  ;;  %4722 = vmatmul.mubr.msk.f32.vlgmr.msra.gmra.mrb[0].mxu0 %vm182_vm1, %v4719_v21  ;;  %986 = vmatprep.mubr.f32.mxu1 %v5069_v0 }
  0x8a   : > { %v663_v26 = vpop.permute.xlu1 %662  ;;  %v678_v27 = vsel %vm672_vm3, %v659_v22, %v661_v25  ;;  %915 = vmatprep.mubr.f32.mxu0 %v5069_v0 }
  0x8b   : > { %3152 = vrot.lane.b32.xlu0 %v5161_v9, %s5076_s27  ;;  %4726 = vmatprep.subr.msk.mxu0 %vm186_vm0, %v678_v27  ;;  %v679_v32 = vsel %vm672_vm3, %v661_v25, %v663_v26  ;;  %v5079_v25 = vmov 0  }
  0x8c   : > { %3154 = vrot.lane.b32.xlu1 %v5121_v2, %s5076_s27  ;;  %4727 = vmatpush1.msk.msra.mxu0 %vm186_vm0, %v677_v28 }
  0x8d   : > { %v665_v29 = vpop.permute.xlu0 %664  ;;  %4728 = vmatmul.mubr.msk.f32.vlgmr.msra.gmra.mrb[2].mxu0 %vm182_vm1, %v4719_v21  ;;  %5054 = vset.pattern.permute.xlu0 %v5079_v25 }
  0x8e   : > { %v667_v30 = vpop.permute.xlu1 %666  ;;  %v680_v31 = vsel %vm672_vm3, %v663_v26, %v665_v29  ;;  %1057 = vmatprep.mubr.f32.mxu0 %v5069_v0 }
  0x8f   : > { %3156 = vrot.lane.b32.xlu0 %v5148_v8, %s5076_s27  ;;  %4729 = vmatprep.subr.msk.mxu1 %vm186_vm0, %v680_v31  ;;  %v681_v37 = vsel %vm672_vm3, %v665_v29, %v667_v30  ;;  %v4773_v31 = vld [vmem:[%s5680_s1 + $0x20] sm:$0xff] }
  0x90   : > { %3158 = vrot.lane.b32.xlu1 %v5175_v10, %s5076_s27  ;;  %4730 = vmatpush1.msk.msra.mxu1 %vm186_vm0, %v679_v32 }
  0x91   : > { %v669_v33 = vpop.permute.xlu0 %668  ;;  %4888 = vmatprep.subr.mxu1 %v5069_v0  ;;  %4731 = vmatmul.mubr.msk.f32.vlgmr.msra.gmra.mrb[2].mxu1 %vm182_vm1, %v4719_v21 }
  0x92   : > { %v671_v34 = vpop.permute.xlu1 %670  ;;  %v682_v35 = vsel %vm672_vm3, %v667_v30, %v669_v33  ;;  %4890 = vmatprep.mubr.msk.f32.mxu1 %vm5071_vm2, %v5069_v0 }
  0x93   : > { %v683_v36 = vsel %vm672_vm3, %v669_v33, %v671_v34  ;;  %3160 = vrot.lane.b32.xlu0 %v5195_v12, %s5076_s27  ;;  %4732 = vmatprep.subr.msk.mxu0 %vm186_vm0, %v682_v35 }
  0x94   : > { %3162 = vrot.lane.b32.xlu1 %v5178_v11, %s5076_s27  ;;  %4889 = vmatpush3.msk.msra.mxu1 %vm186_vm0, %v683_v36 }
  0x95   : > { %4733 = vmatpush1.msk.msra.mxu0 %vm186_vm0, %v681_v37  ;;  %v1150_v38 = vpop.permute.xlu0 %1149  ;;  %4891 = vmatmul.mubr.msk.f32.vlgmr.msra.gmra.mrb[4].mxu1 %vm182_vm1, %v4719_v21 }
  0x96   : > { %v1152_v40 = vpop.permute.xlu1 %1151  ;;  %4734 = vmatmul.mubr.msk.f32.vlgmr.msra.gmra.mrb[4].mxu0 %vm182_vm1, %v4719_v21  ;;  %1343 = vmatprep.mubr.f32.mxu1 %v5069_v0 }
  0x97   : > { %v1173_v41 = vsel %vm1171_vm4, %v1150_v38, %v1152_v40  ;;  %3164 = vrot.lane.b32.xlu0 %v5214_v13, %s5076_s27  ;;  %1272 = vmatprep.mubr.f32.mxu0 %v5069_v0 }
  0x98   : > { %3166 = vrot.lane.b32.xlu1 %v5326_v39, %s5076_s27  ;;  %4738 = vmatprep.subr.msk.mxu0 %vm186_vm0, %v1173_v41  ;;  %s5663_s27 = scalar_lea.vmem %s5682_s3, %s4700_s24 }
  0x99   : > { %v1148_v42 = vpop.permute.xlu0 %1147 }
  0x9a   : > { %v1154_v44 = vpop.permute.xlu1 %1153  ;;  %v1172_v45 = vsel %vm1171_vm4, %v1148_v42, %v1150_v38 }
  0x9b   : > { %3645 = vrot.lane.b32.xlu0 %v5118_v1, %s5077_s5  ;;  %4739 = vmatpush1.msk.msra.mxu0 %vm186_vm0, %v1172_v45  ;;  %v1174_v49 = vsel %vm1171_vm4, %v1152_v40, %v1154_v44 }
  0x9c   : > { %3647 = vrot.lane.b32.xlu1 %v5130_v4, %s5077_s5  ;;  %4740 = vmatmul.mubr.msk.f32.vlgmr.msra.gmra.mrb[0].mxu0 %vm182_vm1, %v4737_v43 }
  0x9d   : > { %v1156_v46 = vpop.permute.xlu0 %1155  ;;  %1414 = vmatprep.mubr.f32.mxu0 %v5069_v0 }
  0x9e   : > { %v1158_v47 = vpop.permute.xlu1 %1157  ;;  %v1175_v48 = vsel %vm1171_vm4, %v1154_v44, %v1156_v46 }
  0x9f   : > { %3643 = vrot.lane.b32.xlu0 %v5136_v5, %s5077_s5  ;;  %4741 = vmatprep.subr.msk.mxu1 %vm186_vm0, %v1175_v48  ;;  %v1176_v53 = vsel %vm1171_vm4, %v1156_v46, %v1158_v47 }
  0xa0   : > { %3649 = vrot.lane.b32.xlu1 %v5139_v6, %s5077_s5  ;;  %4742 = vmatpush1.msk.msra.mxu1 %vm186_vm0, %v1174_v49 }
  0xa1   : > { %v1160_v50 = vpop.permute.xlu0 %1159  ;;  %4743 = vmatmul.mubr.msk.f32.vlgmr.msra.gmra.mrb[0].mxu1 %vm182_vm1, %v4737_v43 }
  0xa2   : > { %v1162_v51 = vpop.permute.xlu1 %1161  ;;  %v1177_v52 = vsel %vm1171_vm4, %v1158_v47, %v1160_v50  ;;  %1485 = vmatprep.mubr.f32.mxu1 %v5069_v0 }
  0xa3   : > { %3651 = vrot.lane.b32.xlu0 %v5161_v9, %s5077_s5  ;;  %4744 = vmatprep.subr.msk.mxu0 %vm186_vm0, %v1177_v52  ;;  %v1178_v57 = vsel %vm1171_vm4, %v1160_v50, %v1162_v51 }
  0xa4   : > { %3653 = vrot.lane.b32.xlu1 %v5121_v2, %s5077_s5  ;;  %4745 = vmatpush1.msk.msra.mxu0 %vm186_vm0, %v1176_v53 }
  0xa5   : > { %v1164_v54 = vpop.permute.xlu0 %1163  ;;  %4746 = vmatmul.mubr.msk.f32.vlgmr.msra.gmra.mrb[2].mxu0 %vm182_vm1, %v4737_v43 }
  0xa6   : > { %v1166_v55 = vpop.permute.xlu1 %1165  ;;  %v1179_v56 = vsel %vm1171_vm4, %v1162_v51, %v1164_v54  ;;  %1556 = vmatprep.mubr.f32.mxu0 %v5069_v0 }
  0xa7   : > { %3655 = vrot.lane.b32.xlu0 %v5148_v8, %s5077_s5  ;;  %4747 = vmatprep.subr.msk.mxu1 %vm186_vm0, %v1179_v56  ;;  %v1180_v62 = vsel %vm1171_vm4, %v1164_v54, %v1166_v55  ;;  %v4791_v54 = vld [vmem:[%s5680_s1 + $0x28] sm:$0xff] }
  0xa8   : > { %3657 = vrot.lane.b32.xlu1 %v5175_v10, %s5077_s5  ;;  %4748 = vmatpush1.msk.msra.mxu1 %vm186_vm0, %v1178_v57 }
  0xa9   : > { %v1168_v58 = vpop.permute.xlu0 %1167  ;;  %4893 = vmatprep.subr.mxu1 %v5069_v0  ;;  %4749 = vmatmul.mubr.msk.f32.vlgmr.msra.gmra.mrb[2].mxu1 %vm182_vm1, %v4737_v43 }
  0xaa   : > { %v1170_v59 = vpop.permute.xlu1 %1169  ;;  %v1181_v60 = vsel %vm1171_vm4, %v1166_v55, %v1168_v58  ;;  %4895 = vmatprep.mubr.msk.f32.mxu1 %vm5071_vm2, %v5069_v0 }
  0xab   : > { %v1182_v61 = vsel %vm1171_vm4, %v1168_v58, %v1170_v59  ;;  %3659 = vrot.lane.b32.xlu0 %v5195_v12, %s5077_s5  ;;  %4750 = vmatprep.subr.msk.mxu0 %vm186_vm0, %v1181_v60 }
  0xac   : > { %3661 = vrot.lane.b32.xlu1 %v5178_v11, %s5077_s5  ;;  %4894 = vmatpush3.msk.msra.mxu1 %vm186_vm0, %v1182_v61 }
  0xad   : > { %4751 = vmatpush1.msk.msra.mxu0 %vm186_vm0, %v1180_v62  ;;  %v1649_v63 = vpop.permute.xlu0 %1648  ;;  %4896 = vmatmul.mubr.msk.f32.vlgmr.msra.gmra.mrb[4].mxu1 %vm182_vm1, %v4737_v43 }
  0xae   : > { %v1651_v3 = vpop.permute.xlu1 %1650  ;;  %4752 = vmatmul.mubr.msk.f32.vlgmr.msra.gmra.mrb[4].mxu0 %vm182_vm1, %v4737_v43  ;;  %1842 = vmatprep.mubr.f32.mxu1 %v5069_v0 }
  0xaf   : > { %v1672_v7 = vsel %vm1670_vm5, %v1649_v63, %v1651_v3  ;;  %3663 = vrot.lane.b32.xlu0 %v5214_v13, %s5077_s5  ;;  %1771 = vmatprep.mubr.f32.mxu0 %v5069_v0 }
  0xb0   : > { %3665 = vrot.lane.b32.xlu1 %v5326_v39, %s5077_s5  ;;  %4756 = vmatprep.subr.msk.mxu0 %vm186_vm0, %v1672_v7 }
  0xb1   : > { %v1647_v14 = vpop.permute.xlu0 %1646 }
  0xb2   : > { %v1653_v16 = vpop.permute.xlu1 %1652  ;;  %v1671_v17 = vsel %vm1670_vm5, %v1647_v14, %v1649_v63 }
  0xb3   : > { %4144 = vrot.lane.b32.xlu0 %v5118_v1, %s5078_s8  ;;  %4757 = vmatpush1.msk.msra.mxu0 %vm186_vm0, %v1671_v17  ;;  %v1673_v21 = vsel %vm1670_vm5, %v1651_v3, %v1653_v16 }
  0xb4   : > { %4146 = vrot.lane.b32.xlu1 %v5130_v4, %s5078_s8  ;;  %4758 = vmatmul.mubr.msk.f32.vlgmr.msra.gmra.mrb[0].mxu0 %vm182_vm1, %v4755_v15 }
  0xb5   : > { %v1655_v18 = vpop.permute.xlu0 %1654  ;;  %1913 = vmatprep.mubr.f32.mxu0 %v5069_v0 }
  0xb6   : > { %v1657_v19 = vpop.permute.xlu1 %1656  ;;  %v1674_v20 = vsel %vm1670_vm5, %v1653_v16, %v1655_v18 }
  0xb7   : > { %4142 = vrot.lane.b32.xlu0 %v5136_v5, %s5078_s8  ;;  %4759 = vmatprep.subr.msk.mxu1 %vm186_vm0, %v1674_v20  ;;  %v1675_v23 = vsel %vm1670_vm5, %v1655_v18, %v1657_v19 }
  0xb8   : > { %4148 = vrot.lane.b32.xlu1 %v5139_v6, %s5078_s8  ;;  %4760 = vmatpush1.msk.msra.mxu1 %vm186_vm0, %v1673_v21 }
  0xb9   : > { %v1659_v1 = vpop.permute.xlu0 %1658  ;;  %4761 = vmatmul.mubr.msk.f32.vlgmr.msra.gmra.mrb[0].mxu1 %vm182_vm1, %v4755_v15 }
  0xba   : > { %v1661_v4 = vpop.permute.xlu1 %1660  ;;  %v1676_v22 = vsel %vm1670_vm5, %v1657_v19, %v1659_v1  ;;  %1984 = vmatprep.mubr.f32.mxu1 %v5069_v0 }
  0xbb   : > { %4150 = vrot.lane.b32.xlu0 %v5161_v9, %s5078_s8  ;;  %4762 = vmatprep.subr.msk.mxu0 %vm186_vm0, %v1676_v22  ;;  %v1677_v26 = vsel %vm1670_vm5, %v1659_v1, %v1661_v4 }
  0xbc   : > { %4152 = vrot.lane.b32.xlu1 %v5121_v2, %s5078_s8  ;;  %4763 = vmatpush1.msk.msra.mxu0 %vm186_vm0, %v1675_v23 }
  0xbd   : > { %v1663_v5 = vpop.permute.xlu0 %1662  ;;  %4764 = vmatmul.mubr.msk.f32.vlgmr.msra.gmra.mrb[2].mxu0 %vm182_vm1, %v4755_v15 }
  0xbe   : > { %v1665_v6 = vpop.permute.xlu1 %1664  ;;  %v1678_v24 = vsel %vm1670_vm5, %v1661_v4, %v1663_v5  ;;  %2055 = vmatprep.mubr.f32.mxu0 %v5069_v0 }
  0xbf   : > { %4154 = vrot.lane.b32.xlu0 %v5148_v8, %s5078_s8  ;;  %4765 = vmatprep.subr.msk.mxu1 %vm186_vm0, %v1678_v24 }
  0xc0   : > { %4156 = vrot.lane.b32.xlu1 %v5175_v10, %s5078_s8  ;;  %4766 = vmatpush1.msk.msra.mxu1 %vm186_vm0, %v1677_v26  ;;  %v1679_v10 = vsel %vm1670_vm5, %v1663_v5, %v1665_v6  ;;  %v4809_v5 = vld [vmem:[%s5680_s1 + $0x30] sm:$0xff] }
  0xc1   : > { %v1667_v2 = vpop.permute.xlu0 %1666  ;;  %4898 = vmatprep.subr.mxu1 %v5069_v0  ;;  %4767 = vmatmul.mubr.msk.f32.vlgmr.msra.gmra.mrb[2].mxu1 %vm182_vm1, %v4755_v15 }
  0xc2   : > { %v1669_v9 = vpop.permute.xlu1 %1668  ;;  %v1680_v27 = vsel %vm1670_vm5, %v1665_v6, %v1667_v2  ;;  %4900 = vmatprep.mubr.msk.f32.mxu1 %vm5071_vm2, %v5069_v0 }
  0xc3   : > { %v1681_v8 = vsel %vm1670_vm5, %v1667_v2, %v1669_v9  ;;  %4158 = vrot.lane.b32.xlu0 %v5195_v12, %s5078_s8  ;;  %4768 = vmatprep.subr.msk.mxu0 %vm186_vm0, %v1680_v27 }
  0xc4   : > { %4160 = vrot.lane.b32.xlu1 %v5178_v11, %s5078_s8  ;;  %4899 = vmatpush3.msk.msra.mxu1 %vm186_vm0, %v1681_v8  ;;  %v164_v11 = vld [vmem:[%s5681_s2] sm:$0xff] }
  0xc5   : > { %4769 = vmatpush1.msk.msra.mxu0 %vm186_vm0, %v1679_v10  ;;  %v2148_v28 = vpop.permute.xlu0 %2147  ;;  %4901 = vmatmul.mubr.msk.f32.vlgmr.msra.gmra.mrb[4].mxu1 %vm182_vm1, %v4755_v15 }
  0xc6   : > { %v2150_v29 = vpop.permute.xlu1 %2149  ;;  %4770 = vmatmul.mubr.msk.f32.vlgmr.msra.gmra.mrb[4].mxu0 %vm182_vm1, %v4755_v15  ;;  %2341 = vmatprep.mubr.f32.mxu1 %v5069_v0 }
  0xc7   : > { %v2171_v12 = vsel %vm2169_vm6, %v2148_v28, %v2150_v29  ;;  %4162 = vrot.lane.b32.xlu0 %v5214_v13, %s5078_s8  ;;  %2270 = vmatprep.mubr.f32.mxu0 %v5069_v0 }
  0xc8   : > { %4164 = vrot.lane.b32.xlu1 %v5326_v39, %s5078_s8  ;;  %4774 = vmatprep.subr.msk.mxu0 %vm186_vm0, %v2171_v12 }
  0xc9   : > { %v2146_v30 = vpop.permute.xlu0 %2145 }
  0xca   : > { %v2152_v32 = vpop.permute.xlu1 %2151  ;;  %v2170_v33 = vsel %vm2169_vm6, %v2146_v30, %v2148_v28 }
  0xcb   : > { %4775 = vmatpush1.msk.msra.mxu0 %vm186_vm0, %v2170_v33  ;;  %167 = vperm.xlu0 %5054, %v164_v11   ;;  %v2172_v36 = vsel %vm2169_vm6, %v2150_v29, %v2152_v32 }
  0xcc   : > { %4776 = vmatmul.mubr.msk.f32.vlgmr.msra.gmra.mrb[0].mxu0 %vm182_vm1, %v4773_v31 }
  0xcd   : > { %v2154_v13 = vpop.permute.xlu0 %2153  ;;  %2412 = vmatprep.mubr.f32.mxu0 %v5069_v0 }
  0xce   : > { %v2156_v34 = vpop.permute.xlu1 %2155  ;;  %v2173_v35 = vsel %vm2169_vm6, %v2152_v32, %v2154_v13 }
  0xcf   : > { %4777 = vmatprep.subr.msk.mxu1 %vm186_vm0, %v2173_v35  ;;  %v2174_v40 = vsel %vm2169_vm6, %v2154_v13, %v2156_v34 }
  0xd0   : > { %4778 = vmatpush1.msk.msra.mxu1 %vm186_vm0, %v2172_v36 }
  0xd1   : > { %v2158_v37 = vpop.permute.xlu0 %2157  ;;  %4779 = vmatmul.mubr.msk.f32.vlgmr.msra.gmra.mrb[0].mxu1 %vm182_vm1, %v4773_v31 }
  0xd2   : > { %v2160_v38 = vpop.permute.xlu1 %2159  ;;  %v2175_v39 = vsel %vm2169_vm6, %v2156_v34, %v2158_v37  ;;  %2483 = vmatprep.mubr.f32.mxu1 %v5069_v0 }
  0xd3   : > { %4780 = vmatprep.subr.msk.mxu0 %vm186_vm0, %v2175_v39  ;;  %v2176_v44 = vsel %vm2169_vm6, %v2158_v37, %v2160_v38  ;;  %v4827_v39 = vld [vmem:[%s5680_s1 + $0x38] sm:$0xff] }
  0xd4   : > { %4781 = vmatpush1.msk.msra.mxu0 %vm186_vm0, %v2174_v40 }
  0xd5   : > { %v2162_v41 = vpop.permute.xlu0 %2161  ;;  %4782 = vmatmul.mubr.msk.f32.vlgmr.msra.gmra.mrb[2].mxu0 %vm182_vm1, %v4773_v31 }
  0xd6   : > { %v2164_v42 = vpop.permute.xlu1 %2163  ;;  %v2177_v43 = vsel %vm2169_vm6, %v2160_v38, %v2162_v41  ;;  %2554 = vmatprep.mubr.f32.mxu0 %v5069_v0 }
  0xd7   : > { %4783 = vmatprep.subr.msk.mxu1 %vm186_vm0, %v2177_v43  ;;  %v2178_v48 = vsel %vm2169_vm6, %v2162_v41, %v2164_v42 }
  0xd8   : > { %4784 = vmatpush1.msk.msra.mxu1 %vm186_vm0, %v2176_v44 }
  0xd9   : > { %v2166_v45 = vpop.permute.xlu0 %2165  ;;  %4903 = vmatprep.subr.mxu1 %v5069_v0  ;;  %4785 = vmatmul.mubr.msk.f32.vlgmr.msra.gmra.mrb[2].mxu1 %vm182_vm1, %v4773_v31 }
  0xda   : > { %v2168_v46 = vpop.permute.xlu1 %2167  ;;  %v2179_v47 = vsel %vm2169_vm6, %v2164_v42, %v2166_v45  ;;  %4905 = vmatprep.mubr.msk.f32.mxu1 %vm5071_vm2, %v5069_v0 }
  0xdb   : > { %v2180_v49 = vsel %vm2169_vm6, %v2166_v45, %v2168_v46  ;;  %4786 = vmatprep.subr.msk.mxu0 %vm186_vm0, %v2179_v47 }
  0xdc   : > { %4904 = vmatpush3.msk.msra.mxu1 %vm186_vm0, %v2180_v49  ;;  %4787 = vmatpush1.msk.msra.mxu0 %vm186_vm0, %v2178_v48 }
  0xdd   : > { %v2647_v50 = vpop.permute.xlu0 %2646  ;;  %4788 = vmatmul.mubr.msk.f32.vlgmr.msra.gmra.mrb[4].mxu0 %vm182_vm1, %v4773_v31  ;;  %4906 = vmatmul.mubr.msk.f32.vlgmr.msra.gmra.mrb[4].mxu1 %vm182_vm1, %v4773_v31 }
  0xde   : > { %v2649_v51 = vpop.permute.xlu1 %2648  ;;  %2769 = vmatprep.mubr.f32.mxu0 %v5069_v0  ;;  %2840 = vmatprep.mubr.f32.mxu1 %v5069_v0 }
  0xdf   : > { %v2670_v52 = vsel %vm2668_vm7, %v2647_v50, %v2649_v51 }
  0xe0   : > { %4792 = vmatprep.subr.msk.mxu0 %vm186_vm0, %v2670_v52 }
  0xe1   : > { %v2645_v53 = vpop.permute.xlu0 %2644 }
  0xe2   : > { %v2651_v55 = vpop.permute.xlu1 %2650  ;;  %v2669_v56 = vsel %vm2668_vm7, %v2645_v53, %v2647_v50 }
  0xe3   : > { %4793 = vmatpush1.msk.msra.mxu0 %vm186_vm0, %v2669_v56  ;;  %v2671_v60 = vsel %vm2668_vm7, %v2649_v51, %v2651_v55 }
  0xe4   : > { %4794 = vmatmul.mubr.msk.f32.vlgmr.msra.gmra.mrb[0].mxu0 %vm182_vm1, %v4791_v54 }
  0xe5   : > { %v2653_v57 = vpop.permute.xlu0 %2652  ;;  %2911 = vmatprep.mubr.f32.mxu0 %v5069_v0 }
  0xe6   : > { %v2655_v58 = vpop.permute.xlu1 %2654  ;;  %v2672_v59 = vsel %vm2668_vm7, %v2651_v55, %v2653_v57 }
  0xe7   : > { %4795 = vmatprep.subr.msk.mxu1 %vm186_vm0, %v2672_v59  ;;  %v2673_v3 = vsel %vm2668_vm7, %v2653_v57, %v2655_v58 }
  0xe8   : > { %4796 = vmatpush1.msk.msra.mxu1 %vm186_vm0, %v2671_v60 }
  0xe9   : > { %v2657_v61 = vpop.permute.xlu0 %2656  ;;  %4797 = vmatmul.mubr.msk.f32.vlgmr.msra.gmra.mrb[0].mxu1 %vm182_vm1, %v4791_v54 }
  0xea   : > { %v2659_v62 = vpop.permute.xlu1 %2658  ;;  %v2674_v63 = vsel %vm2668_vm7, %v2655_v58, %v2657_v61  ;;  %2982 = vmatprep.mubr.f32.mxu1 %v5069_v0 }
  0xeb   : > { %4798 = vmatprep.subr.msk.mxu0 %vm186_vm0, %v2674_v63  ;;  %v2675_v16 = vsel %vm2668_vm7, %v2657_v61, %v2659_v62  ;;  %v4845_v63 = vld [vmem:[%s5680_s1 + $0x40] sm:$0xff] }
  0xec   : > { %4799 = vmatpush1.msk.msra.mxu0 %vm186_vm0, %v2673_v3 }
  0xed   : > { %v2661_v7 = vpop.permute.xlu0 %2660  ;;  %4800 = vmatmul.mubr.msk.f32.vlgmr.msra.gmra.mrb[2].mxu0 %vm182_vm1, %v4791_v54 }
  0xee   : > { %v2663_v14 = vpop.permute.xlu1 %2662  ;;  %v2676_v15 = vsel %vm2668_vm7, %v2659_v62, %v2661_v7  ;;  %3053 = vmatprep.mubr.f32.mxu0 %v5069_v0 }
  0xef   : > { %4801 = vmatprep.subr.msk.mxu1 %vm186_vm0, %v2676_v15  ;;  %v2677_v20 = vsel %vm2668_vm7, %v2661_v7, %v2663_v14 }
  0xf0   : > { %4802 = vmatpush1.msk.msra.mxu1 %vm186_vm0, %v2675_v16 }
  0xf1   : > { %v2665_v17 = vpop.permute.xlu0 %2664  ;;  %4908 = vmatprep.subr.mxu1 %v5069_v0  ;;  %4803 = vmatmul.mubr.msk.f32.vlgmr.msra.gmra.mrb[2].mxu1 %vm182_vm1, %v4791_v54 }
  0xf2   : > { %v2667_v18 = vpop.permute.xlu1 %2666  ;;  %v2678_v19 = vsel %vm2668_vm7, %v2663_v14, %v2665_v17  ;;  %4910 = vmatprep.mubr.msk.f32.mxu1 %vm5071_vm2, %v5069_v0 }
  0xf3   : > { %v2679_v21 = vsel %vm2668_vm7, %v2665_v17, %v2667_v18  ;;  %4804 = vmatprep.subr.msk.mxu0 %vm186_vm0, %v2678_v19 }
  0xf4   : > { %4909 = vmatpush3.msk.msra.mxu1 %vm186_vm0, %v2679_v21  ;;  %4805 = vmatpush1.msk.msra.mxu0 %vm186_vm0, %v2677_v20 }
  0xf5   : > { %v3147_v1 = vpop.permute.xlu0 %3146  ;;  %4806 = vmatmul.mubr.msk.f32.vlgmr.msra.gmra.mrb[4].mxu0 %vm182_vm1, %v4791_v54  ;;  %4911 = vmatmul.mubr.msk.f32.vlgmr.msra.gmra.mrb[4].mxu1 %vm182_vm1, %v4791_v54 }
  0xf6   : > { %v3149_v4 = vpop.permute.xlu1 %3148  ;;  %3269 = vmatprep.mubr.f32.mxu0 %v5069_v0  ;;  %3340 = vmatprep.mubr.f32.mxu1 %v5069_v0 }
  0xf7   : > { %v3170_v22 = vsel %vm3168_vm8, %v3147_v1, %v3149_v4 }
  0xf8   : > { %4810 = vmatprep.subr.msk.mxu0 %vm186_vm0, %v3170_v22 }
  0xf9   : > { %v3145_v23 = vpop.permute.xlu0 %3144 }
  0xfa   : > { %v3151_v6 = vpop.permute.xlu1 %3150  ;;  %v3169_v24 = vsel %vm3168_vm8, %v3145_v23, %v3147_v1 }
  0xfb   : > { %4811 = vmatpush1.msk.msra.mxu0 %vm186_vm0, %v3169_v24  ;;  %v3171_v9 = vsel %vm3168_vm8, %v3149_v4, %v3151_v6 }
  0xfc   : > { %4812 = vmatmul.mubr.msk.f32.vlgmr.msra.gmra.mrb[0].mxu0 %vm182_vm1, %v4809_v5 }
  0xfd   : > { %v3153_v25 = vpop.permute.xlu0 %3152  ;;  %3411 = vmatprep.mubr.f32.mxu0 %v5069_v0 }
  0xfe   : > { %v3155_v26 = vpop.permute.xlu1 %3154  ;;  %v3172_v2 = vsel %vm3168_vm8, %v3151_v6, %v3153_v25 }
  0xff   : > { %4813 = vmatprep.subr.msk.mxu1 %vm186_vm0, %v3172_v2  ;;  %v3173_v28 = vsel %vm3168_vm8, %v3153_v25, %v3155_v26 }
 0x100   : > { %4814 = vmatpush1.msk.msra.mxu1 %vm186_vm0, %v3171_v9 }
 0x101   : > { %v3157_v27 = vpop.permute.xlu0 %3156  ;;  %4815 = vmatmul.mubr.msk.f32.vlgmr.msra.gmra.mrb[0].mxu1 %vm182_vm1, %v4809_v5 }
 0x102   : > { %v3159_v8 = vpop.permute.xlu1 %3158  ;;  %v3174_v10 = vsel %vm3168_vm8, %v3155_v26, %v3157_v27  ;;  %3482 = vmatprep.mubr.f32.mxu1 %v5069_v0 }
 0x103   : > { %4816 = vmatprep.subr.msk.mxu0 %vm186_vm0, %v3174_v10  ;;  %v3175_v30 = vsel %vm3168_vm8, %v3157_v27, %v3159_v8 }
 0x104   : > { %4817 = vmatpush1.msk.msra.mxu0 %vm186_vm0, %v3173_v28 }
 0x105   : > { %v3161_v29 = vpop.permute.xlu0 %3160  ;;  %4818 = vmatmul.mubr.msk.f32.vlgmr.msra.gmra.mrb[2].mxu0 %vm182_vm1, %v4809_v5 }
 0x106   : > { %v3163_v12 = vpop.permute.xlu1 %3162  ;;  %v3176_v11 = vsel %vm3168_vm8, %v3159_v8, %v3161_v29  ;;  %3553 = vmatprep.mubr.f32.mxu0 %v5069_v0 }
 0x107   : > { %4819 = vmatprep.subr.msk.mxu1 %vm186_vm0, %v3176_v11  ;;  %v3177_v13 = vsel %vm3168_vm8, %v3161_v29, %v3163_v12 }
 0x108   : > { %4820 = vmatpush1.msk.msra.mxu1 %vm186_vm0, %v3175_v30 }
 0x109   : > { %v3165_v31 = vpop.permute.xlu0 %3164  ;;  %4913 = vmatprep.subr.mxu1 %v5069_v0  ;;  %4821 = vmatmul.mubr.msk.f32.vlgmr.msra.gmra.mrb[2].mxu1 %vm182_vm1, %v4809_v5 }
 0x10a   : > { %v3167_v32 = vpop.permute.xlu1 %3166  ;;  %v3178_v33 = vsel %vm3168_vm8, %v3163_v12, %v3165_v31  ;;  %4915 = vmatprep.mubr.msk.f32.mxu1 %vm5071_vm2, %v5069_v0 }
 0x10b   : > { %v3179_v34 = vsel %vm3168_vm8, %v3165_v31, %v3167_v32  ;;  %4822 = vmatprep.subr.msk.mxu0 %vm186_vm0, %v3178_v33 }
 0x10c   : > { %4914 = vmatpush3.msk.msra.mxu1 %vm186_vm0, %v3179_v34  ;;  %4823 = vmatpush1.msk.msra.mxu0 %vm186_vm0, %v3177_v13 }
 0x10d   : > { %v3646_v35 = vpop.permute.xlu0 %3645  ;;  %4824 = vmatmul.mubr.msk.f32.vlgmr.msra.gmra.mrb[4].mxu0 %vm182_vm1, %v4809_v5  ;;  %4916 = vmatmul.mubr.msk.f32.vlgmr.msra.gmra.mrb[4].mxu1 %vm182_vm1, %v4809_v5 }
 0x10e   : > { %v3648_v36 = vpop.permute.xlu1 %3647  ;;  %3768 = vmatprep.mubr.f32.mxu0 %v5069_v0  ;;  %3839 = vmatprep.mubr.f32.mxu1 %v5069_v0 }
 0x10f   : > { %v3669_v37 = vsel %vm3667_vm9, %v3646_v35, %v3648_v36 }
 0x110   : > { %4828 = vmatprep.subr.msk.mxu0 %vm186_vm0, %v3669_v37 }
 0x111   : > { %v3644_v38 = vpop.permute.xlu0 %3643 }
 0x112   : > { %v3650_v40 = vpop.permute.xlu1 %3649  ;;  %v3668_v41 = vsel %vm3667_vm9, %v3644_v38, %v3646_v35 }
 0x113   : > { %4829 = vmatpush1.msk.msra.mxu0 %vm186_vm0, %v3668_v41  ;;  %v3670_v45 = vsel %vm3667_vm9, %v3648_v36, %v3650_v40 }
 0x114   : > { %4830 = vmatmul.mubr.msk.f32.vlgmr.msra.gmra.mrb[0].mxu0 %vm182_vm1, %v4827_v39 }
 0x115   : > { %v3652_v42 = vpop.permute.xlu0 %3651  ;;  %3910 = vmatprep.mubr.f32.mxu0 %v5069_v0 }
 0x116   : > { %v3654_v43 = vpop.permute.xlu1 %3653  ;;  %v3671_v44 = vsel %vm3667_vm9, %v3650_v40, %v3652_v42 }
 0x117   : > { %4831 = vmatprep.subr.msk.mxu1 %vm186_vm0, %v3671_v44  ;;  %v3672_v49 = vsel %vm3667_vm9, %v3652_v42, %v3654_v43 }
 0x118   : > { %4832 = vmatpush1.msk.msra.mxu1 %vm186_vm0, %v3670_v45 }
 0x119   : > { %v3656_v46 = vpop.permute.xlu0 %3655  ;;  %4833 = vmatmul.mubr.msk.f32.vlgmr.msra.gmra.mrb[0].mxu1 %vm182_vm1, %v4827_v39 }
 0x11a   : > { %v3658_v47 = vpop.permute.xlu1 %3657  ;;  %v3673_v48 = vsel %vm3667_vm9, %v3654_v43, %v3656_v46  ;;  %3981 = vmatprep.mubr.f32.mxu1 %v5069_v0 }
 0x11b   : > { %4834 = vmatprep.subr.msk.mxu0 %vm186_vm0, %v3673_v48  ;;  %v3674_v53 = vsel %vm3667_vm9, %v3656_v46, %v3658_v47 }
 0x11c   : > { %4835 = vmatpush1.msk.msra.mxu0 %vm186_vm0, %v3672_v49 }
 0x11d   : > { %v3660_v50 = vpop.permute.xlu0 %3659  ;;  %4836 = vmatmul.mubr.msk.f32.vlgmr.msra.gmra.mrb[2].mxu0 %vm182_vm1, %v4827_v39 }
 0x11e   : > { %v3662_v51 = vpop.permute.xlu1 %3661  ;;  %v3675_v52 = vsel %vm3667_vm9, %v3658_v47, %v3660_v50  ;;  %4052 = vmatprep.mubr.f32.mxu0 %v5069_v0 }
 0x11f   : > { %4837 = vmatprep.subr.msk.mxu1 %vm186_vm0, %v3675_v52  ;;  %v3676_v57 = vsel %vm3667_vm9, %v3660_v50, %v3662_v51 }
 0x120   : > { %4838 = vmatpush1.msk.msra.mxu1 %vm186_vm0, %v3674_v53 }
 0x121   : > { %v3664_v54 = vpop.permute.xlu0 %3663  ;;  %4918 = vmatprep.subr.mxu1 %v5069_v0  ;;  %4839 = vmatmul.mubr.msk.f32.vlgmr.msra.gmra.mrb[2].mxu1 %vm182_vm1, %v4827_v39 }
 0x122   : > { %v3666_v55 = vpop.permute.xlu1 %3665  ;;  %v3677_v56 = vsel %vm3667_vm9, %v3662_v51, %v3664_v54  ;;  %4920 = vmatprep.mubr.msk.f32.mxu1 %vm5071_vm2, %v5069_v0 }
 0x123   : > { %v3678_v58 = vsel %vm3667_vm9, %v3664_v54, %v3666_v55  ;;  %4840 = vmatprep.subr.msk.mxu0 %vm186_vm0, %v3677_v56 }
 0x124   : > { %4919 = vmatpush3.msk.msra.mxu1 %vm186_vm0, %v3678_v58  ;;  %4841 = vmatpush1.msk.msra.mxu0 %vm186_vm0, %v3676_v57 }
 0x125   : > { %v4145_v59 = vpop.permute.xlu0 %4144  ;;  %4842 = vmatmul.mubr.msk.f32.vlgmr.msra.gmra.mrb[4].mxu0 %vm182_vm1, %v4827_v39  ;;  %4921 = vmatmul.mubr.msk.f32.vlgmr.msra.gmra.mrb[4].mxu1 %vm182_vm1, %v4827_v39 }
 0x126   : > { %v4147_v60 = vpop.permute.xlu1 %4146  ;;  %4267 = vmatprep.mubr.f32.mxu0 %v5069_v0  ;;  %4338 = vmatprep.mubr.f32.mxu1 %v5069_v0 }
 0x127   : > { %v4168_v61 = vsel %vm4166_vm10, %v4145_v59, %v4147_v60 }
 0x128   : > { %4846 = vmatprep.subr.msk.mxu0 %vm186_vm0, %v4168_v61 }
 0x129   : > { %v4143_v62 = vpop.permute.xlu0 %4142 }
 0x12a   : > { %v4149_v3 = vpop.permute.xlu1 %4148  ;;  %v4167_v7 = vsel %vm4166_vm10, %v4143_v62, %v4145_v59 }
 0x12b   : > { %4847 = vmatpush1.msk.msra.mxu0 %vm186_vm0, %v4167_v7  ;;  %v4169_v17 = vsel %vm4166_vm10, %v4147_v60, %v4149_v3 }
 0x12c   : > { %4848 = vmatmul.mubr.msk.f32.vlgmr.msra.gmra.mrb[0].mxu0 %vm182_vm1, %v4845_v63 }
 0x12d   : > { %v4151_v14 = vpop.permute.xlu0 %4150  ;;  %4409 = vmatprep.mubr.f32.mxu0 %v5069_v0 }
 0x12e   : > { %v4153_v15 = vpop.permute.xlu1 %4152  ;;  %v4170_v16 = vsel %vm4166_vm10, %v4149_v3, %v4151_v14 }
 0x12f   : > { %4849 = vmatprep.subr.msk.mxu1 %vm186_vm0, %v4170_v16  ;;  %v4171_v21 = vsel %vm4166_vm10, %v4151_v14, %v4153_v15 }
 0x130   : > { %4850 = vmatpush1.msk.msra.mxu1 %vm186_vm0, %v4169_v17 }
 0x131   : > { %4851 = vmatmul.mubr.msk.f32.vlgmr.msra.gmra.mrb[0].mxu1 %vm182_vm1, %v4845_v63  ;;  %v4155_v18 = vpop.permute.xlu0 %4154 }
 0x132   : > { %v4157_v19 = vpop.permute.xlu1 %4156  ;;  %v4172_v20 = vsel %vm4166_vm10, %v4153_v15, %v4155_v18  ;;  %4480 = vmatprep.mubr.f32.mxu1 %v5069_v0 }
 0x133   : > { %4852 = vmatprep.subr.msk.mxu0 %vm186_vm0, %v4172_v20  ;;  %v4173_v23 = vsel %vm4166_vm10, %v4155_v18, %v4157_v19 }
 0x134   : > { %4853 = vmatpush1.msk.msra.mxu0 %vm186_vm0, %v4171_v21 }
 0x135   : > { %v4159_v1 = vpop.permute.xlu0 %4158  ;;  %4854 = vmatmul.mubr.msk.f32.vlgmr.msra.gmra.mrb[2].mxu0 %vm182_vm1, %v4845_v63 }
 0x136   : > { %v4161_v4 = vpop.permute.xlu1 %4160  ;;  %v4174_v22 = vsel %vm4166_vm10, %v4157_v19, %v4159_v1  ;;  %4551 = vmatprep.mubr.f32.mxu0 %v5069_v0 }
 0x137   : > { %4855 = vmatprep.subr.msk.mxu1 %vm186_vm0, %v4174_v22  ;;  %v4175_v25 = vsel %vm4166_vm10, %v4159_v1, %v4161_v4 }
 0x138   : > { %4856 = vmatpush1.msk.msra.mxu1 %vm186_vm0, %v4173_v23 }
 0x139   : > { %4857 = vmatmul.mubr.msk.f32.vlgmr.msra.gmra.mrb[2].mxu1 %vm182_vm1, %v4845_v63  ;;  %v4163_v5 = vpop.permute.xlu0 %4162  ;;  %4923 = vmatprep.subr.mxu1 %v5069_v0 }
 0x13a   : > { %v4165_v6 = vpop.permute.xlu1 %4164  ;;  %v4176_v24 = vsel %vm4166_vm10, %v4161_v4, %v4163_v5  ;;  %4925 = vmatprep.mubr.msk.f32.mxu1 %vm5071_vm2, %v5069_v0 }
 0x13b   : > { %v4177_v26 = vsel %vm4166_vm10, %v4163_v5, %v4165_v6  ;;  %4858 = vmatprep.subr.msk.mxu0 %vm186_vm0, %v4176_v24 }
 0x13c   : > { %4924 = vmatpush3.msk.msra.mxu1 %vm186_vm0, %v4177_v26  ;;  %4859 = vmatpush1.msk.msra.mxu0 %vm186_vm0, %v4175_v25 }
 0x13d   : > { %4860 = vmatmul.mubr.msk.f32.vlgmr.msra.gmra.mrb[4].mxu0 %vm182_vm1, %v4845_v63  ;;  %4926 = vmatmul.mubr.msk.f32.vlgmr.msra.gmra.mrb[4].mxu1 %vm182_vm1, %v4845_v63 }
 0x14a   : > { %v168_v0 = vpop.permute.xlu0 %167 }
 0x1ff   : > { %v4269_v2 = vpop.f32.mrb[0].mxu0 }
 0x200   : > { %v4928_v9 = vadd.f32 %v4269_v2, %v168_v0  ;;  %v4271_v27 = vpop.f32.mrb[1].mxu0 }
 0x201   : > { %v4929_v8 = vadd.f32 %v4271_v27, %v168_v0 }
 0x202   : > { %4639 = vst [vmem:[%s5663_s27] sm:$0xff] %v4928_v9 }
 0x203   : > { %4640 = vst [vmem:[%s5663_s27 + $0x8] sm:$0xff] %v4929_v8 }
 0x204   : > { %v4340_v10 = vpop.f32.mrb[0].mxu1 }
 0x205   : > { %v4930_v28 = vadd.f32 %v4340_v10, %v168_v0  ;;  %v4342_v29 = vpop.f32.mrb[1].mxu1 }
 0x206   : > { %v4931_v12 = vadd.f32 %v4342_v29, %v168_v0 }
 0x207   : > { %4641 = vst [vmem:[%s5663_s27 + $0x10] sm:$0xff] %v4930_v28 }
 0x208   : > { %4642 = vst [vmem:[%s5663_s27 + $0x18] sm:$0xff] %v4931_v12  ;;  %v4411_v11 = vpop.f32.mrb[2].mxu0 }
 0x209   : > { %v4932_v30 = vadd.f32 %v4411_v11, %v168_v0  ;;  %v4413_v31 = vpop.f32.mrb[3].mxu0 }
 0x20a   : > { %v4933_v32 = vadd.f32 %v4413_v31, %v168_v0 }
 0x20b   : > { %4643 = vst [vmem:[%s5663_s27 + $0x20] sm:$0xff] %v4932_v30 }
 0x20c   : > { %4644 = vst [vmem:[%s5663_s27 + $0x28] sm:$0xff] %v4933_v32  ;;  %v4482_v33 = vpop.f32.mrb[2].mxu1 }
 0x20d   : > { %v4934_v13 = vadd.f32 %v4482_v33, %v168_v0  ;;  %v4484_v34 = vpop.f32.mrb[3].mxu1 }
 0x20e   : > { %v4935_v35 = vadd.f32 %v4484_v34, %v168_v0 }
 0x20f   : > { %4645 = vst [vmem:[%s5663_s27 + $0x30] sm:$0xff] %v4934_v13 }
 0x210   : > { %4646 = vst [vmem:[%s5663_s27 + $0x38] sm:$0xff] %v4935_v35  ;;  %v4553_v36 = vpop.f32.mrb[4].mxu0  ;;  %v4624_v37 = vpop.f32.mrb[4].mxu1 }
 0x211   : > { %v4936_v38 = vadd.f32 %v4553_v36, %v168_v0  ;;  %v4938_v39 = vadd.f32 %v4624_v37, %v168_v0  ;;  %v4555_v40 = vpop.f32.mrb[5].mxu0  ;;  %v4927_v41 = vpop.f32.mrb[5].mxu1 }
 0x212   : > { %v4937_v42 = vadd.f32 %v4555_v40, %v168_v0 }
 0x213   : > { %4647 = vst [vmem:[%s5663_s27 + $0x40] sm:$0xff] %v4936_v38  ;;  %4649 = vst [vmem:[%s5663_s27 + $0x50] sm:$0xff] %v4938_v39 }
 0x214   : > { %4648 = vst [vmem:[%s5663_s27 + $0x48] sm:$0xff] %v4937_v42 }
 0x215 PF: > { %s13_s12 = sadd.s32 1, %s5067_s12  }
 0x216   : > { %p10_p4 = scmp.ge.s32.totalorder %s13_s12, 5  }
 0x218   :  { %12 = sbr.rel (!%p10_p4) target bundleno = 1 (0x1), region = 68 }

</bundles_post_ra>
